<compile_context>
chip_gen: v5e
topology: v5e:2x2
jax: 0.10.0
libtpu: 0.0.40
codegen_flags: <defaults>
</compile_context>

<pallas_src>
import math

import jax
import jax.numpy as jnp
from jax.experimental import pallas as pl
from jax.experimental.pallas import tpu as pltpu


def _transposed_linear_kernel(x_ref, w_ref, b_ref, o_ref):
    # x_ref: (Bt, D_in, TL)   activation tile
    # w_ref: (TN, D_in)       weight tile (VMEM-resident across B/L steps when N is outer)
    # b_ref: (TN, 1)          bias column, f32
    # o_ref: (Bt, TN, TL)     output tile
    w = w_ref[...]
    b = b_ref[...]
    # Bt is small and static: the unrolled loop keeps every matmul a clean 2-D MXU op
    # (contraction over D_in, lane-dense TL output) with no in-kernel transposes.
    for i in range(x_ref.shape[0]):
        y = jnp.dot(w, x_ref[i], preferred_element_type=jnp.float32)  # (TN, TL), f32 acc
        o_ref[i] = (y + b).astype(o_ref.dtype)


def _pick_tile(dim, target, align):
    """Largest multiple of `align` that divides `dim`, capped at `target`.
    Falls back to the full dim (always a legal block) if `dim` is not aligned."""
    if dim <= 0 or dim % align != 0:
        return dim
    cap = min(dim, max(int(target), align))
    best = align
    t = align
    while t <= cap:
        if dim % t == 0:
            best = t
        t += align
    return best


def _vmem_capacity_bytes():
    """Trace-time VMEM capacity; conservative (v7x-sized) fallback if the query fails."""
    try:
        info = pltpu.get_tpu_info()
        for name in ("vmem_capacity_bytes", "vmem_size_bytes", "vmem_bytes"):
            cap = getattr(info, name, None)
            if cap:
                return int(cap)
    except Exception:
        pass
    return 64 * 1024 * 1024


def transposed_linear(x, weight, bias=None, *, compute_dtype=None, out_dtype=None,
                      min_pallas_l=64):
    """x: (B, D_in, *L_axes); weight: (D_out, D_in); bias: (D_out,) or None.

    compute_dtype: dtype used for the MXU inputs.  Defaults to x.dtype — activations
      are never cast at the boundary unless explicitly requested (an extra HBM pass).
    out_dtype: output storage dtype (e.g. bf16) when downstream consumers accept it;
      output writes dominate traffic whenever D_out > D_in.
    """
    B, D_in = x.shape[0], x.shape[1]
    trailing = x.shape[2:]
    L = int(math.prod(trailing)) if trailing else 1
    D_out = weight.shape[0]

    if out_dtype is None:
        out_dtype = x.dtype
    if bias is None:
        bias = jnp.zeros((D_out,), dtype=jnp.float32)

    if compute_dtype is None:
        compute_dtype = x.dtype
    if x.dtype != compute_dtype:
        # Explicit opt-in only: for f32 activations this cast costs a full extra HBM
        # pass (read f32 + write bf16) and is a net loss on this memory-bound kernel.
        x = x.astype(compute_dtype)
    w = weight.astype(compute_dtype)                      # tiny: cast is free
    bias_col = bias.reshape(D_out, 1).astype(jnp.float32)  # bias added in f32

    # Degenerate tiny-L shapes: padding to a 128-lane tile would waste most of the HBM
    # traffic on zeros; let XLA handle them directly.
    if L < min_pallas_l:
        y = jnp.einsum('bu...,vu->bv...', x, w, preferred_element_type=jnp.float32)
        y = y + bias.astype(jnp.float32).reshape(-1, *([1] * len(trailing)))
        return y.astype(out_dtype)

    x_itemsize = jnp.dtype(compute_dtype).itemsize
    out_itemsize = jnp.dtype(out_dtype).itemsize

    x_flat = x.reshape(B, D_in, L)

    # Pad L to a multiple of 128: lane-dense, unmasked output stores.
    Lp = ((L + 127) // 128) * 128
    if Lp != L:
        x_flat = jnp.pad(x_flat, ((0, 0), (0, 0), (0, Lp - L)))

    # ---------------- generation-aware budgets ----------------
    vmem_cap = _vmem_capacity_bytes()
    small_vmem = vmem_cap <= 96 * 1024 * 1024            # v7x (64 MiB) vs v5e/v6e (128 MiB)
    block_budget = (5 if small_vmem else 12) * 1024 * 1024
    weight_budget = (8 if small_vmem else 16) * 1024 * 1024
    vmem_cap_limit = (44 if small_vmem else 90) * 1024 * 1024

    # ---------------- D_out (N) tiling: prefer the whole weight resident ----------------
    w_row_bytes = D_in * x_itemsize
    Dp = D_out
    if D_out * w_row_bytes <= weight_budget:
        TN = D_out                                        # n_n == 1: x streams exactly once
    else:
        Dp = ((D_out + 7) // 8) * 8                       # keep TN sublane-aligned
        tn_target = max(8, (weight_budget // max(w_row_bytes, 1)) // 8 * 8)
        TN = _pick_tile(Dp, tn_target, 8)
    n_n = Dp // TN
    if Dp != D_out:
        w = jnp.pad(w, ((0, Dp - D_out), (0, 0)))
        bias_col = jnp.pad(bias_col, ((0, Dp - D_out), (0, 0)))

    # ---------------- L tiling: biggest lane-dense tile under the block budget ----------------
    row_bytes = max(D_in * x_itemsize, TN * out_itemsize)
    tl_target = max(128, (block_budget // max(row_bytes, 1)) // 128 * 128)
    TL = _pick_tile(Lp, tl_target, 128)
    n_l = Lp // TL

    # Batch a few B elements per step only when the grid would otherwise be too short to
    # amortize the ~0.35 us/step pipeline overhead.
    Bt = 1
    if n_n * n_l * B < 8:
        for cand in range(2, min(B, 8) + 1):
            if B % cand == 0 and cand * row_bytes * TL <= block_budget:
                Bt = cand
    n_b = B // Bt

    # ---------------- grid ordering: minimize redundant HBM traffic ----------------
    x_bytes = B * D_in * Lp * x_itemsize
    w_bytes = Dp * D_in * x_itemsize
    out_bytes = B * Dp * Lp * out_itemsize
    extra_n_outer = (n_n - 1) * x_bytes                   # x re-streamed per extra N block
    extra_n_inner = (n_b * n_l - 1) * w_bytes             # weight re-streamed per (b, l) step
    n_outer = extra_n_outer <= extra_n_inner              # trivially True when n_n == 1

    if n_outer:
        grid = (n_n, n_b, n_l)
        x_map = lambda n, b, l: (b, 0, l)
        w_map = lambda n, b, l: (n, 0)
        b_map = lambda n, b, l: (n, 0)
        o_map = lambda n, b, l: (b, n, l)
        # Weight/bias block index only changes on the outermost axis (or never, when
        # n_n == 1): single-buffer them and reclaim VMEM for activation tiles.
        w_spec = pl.BlockSpec((TN, D_in), w_map, pipeline_mode=pl.Buffered(1))
        b_spec = pl.BlockSpec((TN, 1), b_map, pipeline_mode=pl.Buffered(1))
        n_w_bufs = 1
    else:
        grid = (n_b, n_l, n_n)
        x_map = lambda b, l, n: (b, 0, l)
        w_map = lambda b, l, n: (n, 0)
        b_map = lambda b, l, n: (n, 0)
        o_map = lambda b, l, n: (b, n, l)
        # Weight tile changes every inner step: keep default double buffering so its
        # (small) DMA stays hidden; the x tile is the one held resident here.
        w_spec = pl.BlockSpec((TN, D_in), w_map)
        b_spec = pl.BlockSpec((TN, 1), b_map)
        n_w_bufs = 2

    # ---------------- VMEM budget ----------------
    x_blk = Bt * D_in * TL * x_itemsize
    o_blk = Bt * TN * TL * out_itemsize
    w_blk = TN * D_in * x_itemsize + TN * 4
    footprint = 2 * (x_blk + o_blk) + n_w_bufs * w_blk
    vmem_limit = int(min(max(2 * footprint, 16 * 1024 * 1024), vmem_cap_limit))
    vmem_limit = int(min(max(vmem_limit, footprint + (2 << 20)), vmem_cap_limit))

    # Cost estimate reflects the actual traffic of the chosen grid ordering.
    x_reads = n_n if n_outer else 1
    w_reads = 1 if n_outer else n_b * n_l
    cost = pl.CostEstimate(
        flops=2 * B * Dp * D_in * Lp,
        transcendentals=0,
        bytes_accessed=(x_reads * x_bytes + w_reads * w_bytes + Dp * 4 + out_bytes),
    )

    out_flat = pl.pallas_call(
        _transposed_linear_kernel,
        out_shape=jax.ShapeDtypeStruct((B, Dp, Lp), out_dtype),
        grid_spec=pltpu.PrefetchScalarGridSpec(
            num_scalar_prefetch=0,
            grid=grid,
            in_specs=[
                pl.BlockSpec((Bt, D_in, TL), x_map),
                w_spec,
                b_spec,
            ],
            out_specs=pl.BlockSpec((Bt, TN, TL), o_map),
        ),
        compiler_params=pltpu.CompilerParams(
            dimension_semantics=("parallel", "parallel", "parallel"),
            vmem_limit_bytes=vmem_limit,
        ),
        cost_estimate=cost,
    )(x_flat, w, bias_col)

    if Dp != D_out or Lp != L:
        out_flat = out_flat[:, :D_out, :L]
    return out_flat.reshape(B, D_out, *trailing)


def init_params(key, d_input, d_output, dtype=jnp.float32):
    """Deterministic init matching the PyTorch module's __init__ semantics.

    kaiming_uniform_(a=sqrt(5)) on a (d_output, d_input) weight -> fan_in = d_input
    -> bound = 1/sqrt(d_input). Bias ~ U(-1/sqrt(d_input), 1/sqrt(d_input)).
    """
    kw, kb = jax.random.split(key)
    bound = 1.0 / math.sqrt(d_input)
    weight = jax.random.uniform(kw, (d_output, d_input), dtype,
                                minval=-bound, maxval=bound)
    bias = jax.random.uniform(kb, (d_output,), dtype,
                              minval=-bound, maxval=bound)
    return weight, bias


if __name__ == "__main__":
    key = jax.random.PRNGKey(0)
    k_x, k_p = jax.random.split(key)

    B, D_in, D_out = 2, 32, 64
    spatial = (16, 8)  # two trailing "L" axes, flattened to L=128 inside

    x = jax.random.normal(k_x, (B, D_in, *spatial), dtype=jnp.float32)
    weight, bias = init_params(k_p, D_in, D_out)

    # f32 path — must match the einsum reference tightly.
    y = transposed_linear(x, weight, bias)
    y = jax.block_until_ready(y)

    y_ref = jnp.einsum('bu...,vu->bv...', x, weight) + bias.reshape(-1, 1, 1)
    assert y.shape == (B, D_out, *spatial)
    assert jnp.allclose(y, y_ref, atol=1e-5, rtol=1e-5)

    # Reduced-precision path: only meaningful when activations already live in bf16 in
    # HBM (no wrapper-side cast of x), optionally also storing the output in bf16.
    x_bf16 = x.astype(jnp.bfloat16)
    y_bf16 = transposed_linear(x_bf16, weight, bias, out_dtype=jnp.bfloat16)
    y_bf16 = jax.block_until_ready(y_bf16)
    assert y_bf16.shape == (B, D_out, *spatial)
    assert jnp.allclose(y_bf16.astype(jnp.float32), y_ref, atol=2e-1, rtol=2e-1)

    print("KERNEL_OK")
</pallas_src>

<mosaic_0001>
module attributes {stable_mosaic.version = 11 : i64} {
  func.func @_transposed_linear_kernel(%arg0: i32, %arg1: i32, %arg2: i32, %arg3: memref<2x32x128xf32, #tpu.memory_space<vmem>>, %arg4: memref<64x32xf32, #tpu.memory_space<vmem>>, %arg5: memref<64x1xf32, #tpu.memory_space<vmem>>, %arg6: memref<2x64x128xf32, #tpu.memory_space<vmem>>) attributes {dimension_semantics = [#tpu.dimension_semantics<parallel>, #tpu.dimension_semantics<parallel>, #tpu.dimension_semantics<parallel>], iteration_bounds = array<i64: 1, 1, 1>, scalar_prefetch = 0 : i64, scratch_operands = 0 : i64, tpu.core_type = #tpu.core_type<tc>, window_params = [{transform_indices = @transform_0, window_bounds = array<i64: 2, 32, 128>}, {pipeline_mode = #tpu.pipeline_mode<synchronous>, transform_indices = @transform_1, window_bounds = array<i64: 64, 32>}, {pipeline_mode = #tpu.pipeline_mode<synchronous>, transform_indices = @transform_2, window_bounds = array<i64: 64, 1>}, {transform_indices = @transform_3, window_bounds = array<i64: 2, 64, 128>}]} {
    %c0 = arith.constant 0 : index
    %c0_0 = arith.constant 0 : index
    %0 = vector.load %arg4[%c0, %c0_0] : memref<64x32xf32, #tpu.memory_space<vmem>>, vector<64x32xf32>
    %c0_1 = arith.constant 0 : index
    %c0_2 = arith.constant 0 : index
    %1 = vector.load %arg5[%c0_1, %c0_2] : memref<64x1xf32, #tpu.memory_space<vmem>>, vector<64x1xf32>
    %c0_3 = arith.constant 0 : index
    %c0_4 = arith.constant 0 : index
    %c0_5 = arith.constant 0 : index
    %2 = vector.load %arg3[%c0_3, %c0_4, %c0_5] : memref<2x32x128xf32, #tpu.memory_space<vmem>>, vector<1x32x128xf32>
    %3 = vector.shape_cast %2 : vector<1x32x128xf32> to vector<32x128xf32>
    %cst = arith.constant dense<0.000000e+00> : vector<64x128xf32>
    %4 = tpu.matmul %0, %3, %cst {dimension_numbers = #tpu.dot_dimension_numbers<[1], [0], [0], [1], [0, 0, 1, 1], [], []>} : vector<64x32xf32>, vector<32x128xf32>, vector<64x128xf32> -> vector<64x128xf32>
    %5 = vector.broadcast %1 : vector<64x1xf32> to vector<64x128xf32>
    %6 = arith.addf %4, %5 : vector<64x128xf32>
    %c0_6 = arith.constant 0 : index
    %c0_7 = arith.constant 0 : index
    %c0_8 = arith.constant 0 : index
    %7 = vector.load %arg6[%c0_6, %c0_7, %c0_8] : memref<2x64x128xf32, #tpu.memory_space<vmem>>, vector<1x64x128xf32>
    %8 = vector.shape_cast %7 : vector<1x64x128xf32> to vector<64x128xf32>
    %9 = vector.shape_cast %6 : vector<64x128xf32> to vector<1x64x128xf32>
    tpu.vector_store %arg6[%c0_6, %c0_7, %c0_8], %9 {strides = array<i32>} : memref<2x64x128xf32, #tpu.memory_space<vmem>>, vector<1x64x128xf32>,
    %c1 = arith.constant 1 : index
    %c0_9 = arith.constant 0 : index
    %c0_10 = arith.constant 0 : index
    %10 = vector.load %arg3[%c1, %c0_9, %c0_10] : memref<2x32x128xf32, #tpu.memory_space<vmem>>, vector<1x32x128xf32>
    %11 = vector.shape_cast %10 : vector<1x32x128xf32> to vector<32x128xf32>
    %cst_11 = arith.constant dense<0.000000e+00> : vector<64x128xf32>
    %12 = tpu.matmul %0, %11, %cst_11 {dimension_numbers = #tpu.dot_dimension_numbers<[1], [0], [0], [1], [0, 0, 1, 1], [], []>} : vector<64x32xf32>, vector<32x128xf32>, vector<64x128xf32> -> vector<64x128xf32>
    %13 = vector.broadcast %1 : vector<64x1xf32> to vector<64x128xf32>
    %14 = arith.addf %12, %13 : vector<64x128xf32>
    %c1_12 = arith.constant 1 : index
    %c0_13 = arith.constant 0 : index
    %c0_14 = arith.constant 0 : index
    %15 = vector.load %arg6[%c1_12, %c0_13, %c0_14] : memref<2x64x128xf32, #tpu.memory_space<vmem>>, vector<1x64x128xf32>
    %16 = vector.shape_cast %15 : vector<1x64x128xf32> to vector<64x128xf32>
    %17 = vector.shape_cast %14 : vector<64x128xf32> to vector<1x64x128xf32>
    tpu.vector_store %arg6[%c1_12, %c0_13, %c0_14], %17 {strides = array<i32>} : memref<2x64x128xf32, #tpu.memory_space<vmem>>, vector<1x64x128xf32>,
    return
  }
  func.func @transform_0(%arg0: i32, %arg1: i32, %arg2: i32) -> (i32, i32, i32) {
    %c0_i32 = arith.constant 0 : i32
    %c0_i32_0 = arith.constant 0 : i32
    return %arg1, %c0_i32, %arg2 : i32, i32, i32
  }
  func.func @transform_1(%arg0: i32, %arg1: i32, %arg2: i32) -> (i32, i32) {
    %c0_i32 = arith.constant 0 : i32
    %c0_i32_0 = arith.constant 0 : i32
    return %arg0, %c0_i32 : i32, i32
  }
  func.func @transform_2(%arg0: i32, %arg1: i32, %arg2: i32) -> (i32, i32) {
    %c0_i32 = arith.constant 0 : i32
    %c0_i32_0 = arith.constant 0 : i32
    return %arg0, %c0_i32 : i32, i32
  }
  func.func @transform_3(%arg0: i32, %arg1: i32, %arg2: i32) -> (i32, i32, i32) {
    %c0_i32 = arith.constant 0 : i32
    return %arg1, %arg0, %arg2 : i32, i32, i32
  }
}

</mosaic_0001>

<bundles_post_ra>
// kernel: tpu_custom_call.1
= control target key start
LH: loop header
LB: loop body
LE: loop exit
PB: predicated region body
PF: predicated region fallthrough
CT: control target
= control target key end

     0   :  { %vm75_vm0 = vcmask 261120   ;;  %s398_s0 = inlined_call_operand.vmem [shape: f32[2,32,128], index: 0, kind: input, shape index: {}]   ;;  %s399_s1 = inlined_call_operand.vmem [shape: f32[64,32], index: 1, kind: input, shape index: {}]   ;;  %s400_s2 = inlined_call_operand.vmem [shape: f32[64,1], index: 2, kind: input, shape index: {}]   ;;  %s401_s3 = inlined_call_operand.hbm [shape: f32[2,64,128], index: 3, kind: output, shape index: {}]  }
   0x1   :  { %v34_v0 = vld [vmem:[%s398_s0 + $0x18] sm:$0xff]  ;;  %v33_v2 = vld [vmem:[%s398_s0 + $0x10] sm:$0xff]  ;;  %v32_v4 = vld [vmem:[%s398_s0 + $0x8] sm:$0xff] }
   0x2   :  { %v233_v1 = vld [vmem:[%s398_s0 + $0x38] sm:$0xff]  ;;  %112 = vmatpush.msra.mxu0 %v34_v0  ;;  %242 = vmatpush.msra.mxu2 %v34_v0  ;;  %v232_v3 = vld [vmem:[%s398_s0 + $0x30] sm:$0xff]  ;;  %v231_v5 = vld [vmem:[%s398_s0 + $0x28] sm:$0xff] }
   0x3   :  { %166 = vmatpush.msra.mxu1 %v233_v1  ;;  %246 = vmatpush.msra.mxu3 %v233_v1  ;;  %v31_v6 = vld [vmem:[%s398_s0] sm:$0xff] }
   0x4   :  { %113 = vmatpush.msra.mxu0 %v33_v2  ;;  %243 = vmatpush.msra.mxu2 %v33_v2  ;;  %v230_v7 = vld [vmem:[%s398_s0 + $0x20] sm:$0xff] }
   0x5   :  { %167 = vmatpush.msra.mxu1 %v232_v3  ;;  %247 = vmatpush.msra.mxu3 %v232_v3  ;;  %v15_v8 = vld [vmem:[%s399_s1] sm:$0xff] }
   0x6   :  { %114 = vmatpush.msra.mxu0 %v32_v4  ;;  %244 = vmatpush.msra.mxu2 %v32_v4  ;;  %v19_v9 = vld [vmem:[%s399_s1 + $0x20] sm:$0xff] }
   0x7   :  { %168 = vmatpush.msra.mxu1 %v231_v5  ;;  %248 = vmatpush.msra.mxu3 %v231_v5 }
   0x8   :  { %115 = vmatpush.msra.mxu0 %v31_v6  ;;  %245 = vmatpush.msra.mxu2 %v31_v6 }
   0x9   :  { %169 = vmatpush.msra.mxu1 %v230_v7  ;;  %249 = vmatpush.msra.mxu3 %v230_v7 }
   0xa   :  { %8 = vsyncpa [#allocation3], 0  ;;  %222 = vmatmul.msk.f32.vlgmr.msra.gmra.mxu0 %vm75_vm0, %v15_v8  ;;  %226 = vmatmul.msk.f32.vlgmr.msra.gmra.mxu2 %vm75_vm0, %v19_v9  ;;  %v25_v10 = vld [vmem:[%s400_s2 + $0x10] sm:$0xff]  ;;  %v23_v11 = vld [vmem:[%s400_s2] sm:$0xff]  ;;  %v283_v12 = vmov 0   ;;  %s210_s6 = sshll.u32 %s401_s3, 4  ;;  %s211_s6 = int_to_ptr.hbm [resolvable:$true] %s210_s6 }
   0xb   :  { %234 = vmatmul.msk.f32.vlgmr.msra.gmra.mxu1 %vm75_vm0, %v15_v8  ;;  %238 = vmatmul.msk.f32.vlgmr.msra.gmra.mxu3 %vm75_vm0, %v19_v9  ;;  %v27_v13 = vld [vmem:[%s400_s2 + $0x20] sm:$0xff]  ;;  %v16_v14 = vld [vmem:[%s399_s1 + $0x8] sm:$0xff]  ;;  %v26_v16 = vld [vmem:[%s400_s2 + $0x18] sm:$0xff]  ;;  %s285_s7 = smov 128   ;;  %s286_s8 = smov 8  }
   0xc   :  { %255 = vset.pattern.permute.xlu1 %v283_v12  ;;  %254 = vset.pattern.permute.xlu0 %v283_v12  ;;  %v20_v15 = vld [vmem:[%s399_s1 + $0x28] sm:$0xff]  ;;  %v17_v19 = vld [vmem:[%s399_s1 + $0x10] sm:$0xff]  ;;  %v30_v21 = vld [vmem:[%s400_s2 + $0x38] sm:$0xff] }
   0xd   :  { %47 = vperm.xlu1 %255, %v25_v10   ;;  %37 = vperm.xlu0 %254, %v23_v11   ;;  %v24_v17 = vld [vmem:[%s400_s2 + $0x8] sm:$0xff]  ;;  %v21_v20 = vld [vmem:[%s399_s1 + $0x30] sm:$0xff]  ;;  %v18_v23 = vld [vmem:[%s399_s1 + $0x18] sm:$0xff] }
   0xe   :  { %256 = vset.pattern.permute.xlu2 %v283_v12  ;;  %v28_v18 = vld [vmem:[%s400_s2 + $0x28] sm:$0xff]  ;;  %v29_v22 = vld [vmem:[%s400_s2 + $0x30] sm:$0xff]  ;;  %v22_v24 = vld [vmem:[%s399_s1 + $0x38] sm:$0xff]  ;;  %s284_s1 = smov [#allocation2]  }
   0xf   :  { %57 = vperm.xlu2 %256, %v27_v13   ;;  %s208_s2 = sshll.u32 %s284_s1, 4  ;;  %s209_s2 = int_to_ptr.vmem [resolvable:$true] %s208_s2 }
  0x12   :  { %223 = vmatmul.msk.f32.gmra.mxu0 %vm75_vm0, %v16_v14  ;;  %227 = vmatmul.msk.f32.gmra.mxu2 %vm75_vm0, %v20_v15 }
  0x13   :  { %235 = vmatmul.msk.f32.gmra.mxu1 %vm75_vm0, %v16_v14  ;;  %239 = vmatmul.msk.f32.gmra.mxu3 %vm75_vm0, %v20_v15 }
  0x15   :  { %52 = vperm.xlu1 %255, %v26_v16   ;;  %42 = vperm.xlu0 %254, %v24_v17  }
  0x17   :  { %62 = vperm.xlu2 %256, %v28_v18  }
  0x1a   :  { %224 = vmatmul.msk.f32.gmra.mxu0 %vm75_vm0, %v17_v19  ;;  %228 = vmatmul.msk.f32.gmra.mxu2 %vm75_vm0, %v21_v20 }
  0x1b   :  { %236 = vmatmul.msk.f32.gmra.mxu1 %vm75_vm0, %v17_v19  ;;  %240 = vmatmul.msk.f32.gmra.mxu3 %vm75_vm0, %v21_v20 }
  0x1d   :  { %72 = vperm.xlu1 %255, %v30_v21   ;;  %67 = vperm.xlu0 %254, %v29_v22  }
  0x22   :  { %225 = vmatmul.msk.f32.gmra.mxu0 %vm75_vm0, %v18_v23  ;;  %229 = vmatmul.msk.f32.gmra.mxu2 %vm75_vm0, %v22_v24 }
  0x23   :  { %237 = vmatmul.msk.f32.gmra.mxu1 %vm75_vm0, %v18_v23  ;;  %241 = vmatmul.msk.f32.gmra.mxu3 %vm75_vm0, %v22_v24 }
  0x69   :  { %v58_v30 = vpop.permute.xlu2 %57 }
  0x71   :  { %v63_v41 = vpop.permute.xlu2 %62 }
  0x7f   :  { %v38_v25 = vpop.permute.xlu0 %37  ;;  %v48_v39 = vpop.permute.xlu1 %47 }
  0x87   :  { %v117_v26 = vpop.f32.mrf.mxu0  ;;  %v43_v34 = vpop.permute.xlu0 %42 }
  0x88   :  { %v118_v27 = vadd.f32 %v117_v26, %v38_v25  ;;  %v171_v28 = vpop.f32.mrf.mxu1  ;;  %v53_v50 = vpop.permute.xlu1 %52 }
  0x89   :  { %v172_v29 = vadd.f32 %v171_v28, %v38_v25 }
  0x8a   :  { %141 = vst [vmem:[#allocation2] sm:$0xff] %v118_v27 }
  0x8b   :  { %196 = vst [vmem:[#allocation2 + $0x40] sm:$0xff] %v172_v29 }
  0x8d   :  { %v129_v31 = vpop.f32.mrf.mxu2 }
  0x8e   :  { %v130_v32 = vadd.f32 %v129_v31, %v58_v30  ;;  %v183_v33 = vpop.f32.mrf.mxu3 }
  0x8f   :  { %v184_v35 = vadd.f32 %v183_v33, %v58_v30  ;;  %v120_v36 = vpop.f32.mrf.mxu0  ;;  %v68_v51 = vpop.permute.xlu0 %67 }
  0x90   :  { %145 = vst [vmem:[#allocation2 + $0x20] sm:$0xff] %v130_v32  ;;  %v121_v37 = vadd.f32 %v120_v36, %v43_v34  ;;  %v174_v38 = vpop.f32.mrf.mxu1  ;;  %v73_v60 = vpop.permute.xlu1 %72 }
  0x91   :  { %200 = vst [vmem:[#allocation2 + $0x60] sm:$0xff] %v184_v35  ;;  %v175_v40 = vadd.f32 %v174_v38, %v43_v34 }
  0x92   :  { %142 = vst [vmem:[#allocation2 + $0x8] sm:$0xff] %v121_v37 }
  0x93   :  { %197 = vst [vmem:[#allocation2 + $0x48] sm:$0xff] %v175_v40 }
  0x95   :  { %v132_v42 = vpop.f32.mrf.mxu2 }
  0x96   :  { %v133_v43 = vadd.f32 %v132_v42, %v63_v41  ;;  %v186_v44 = vpop.f32.mrf.mxu3 }
  0x97   :  { %v187_v45 = vadd.f32 %v186_v44, %v63_v41  ;;  %v123_v46 = vpop.f32.mrf.mxu0 }
  0x98   :  { %146 = vst [vmem:[#allocation2 + $0x28] sm:$0xff] %v133_v43  ;;  %v124_v47 = vadd.f32 %v123_v46, %v48_v39  ;;  %v177_v48 = vpop.f32.mrf.mxu1 }
  0x99   :  { %201 = vst [vmem:[#allocation2 + $0x68] sm:$0xff] %v187_v45  ;;  %v178_v49 = vadd.f32 %v177_v48, %v48_v39 }
  0x9a   :  { %143 = vst [vmem:[#allocation2 + $0x10] sm:$0xff] %v124_v47 }
  0x9b   :  { %198 = vst [vmem:[#allocation2 + $0x50] sm:$0xff] %v178_v49 }
  0x9d   :  { %v135_v52 = vpop.f32.mrf.mxu2 }
  0x9e   :  { %v136_v53 = vadd.f32 %v135_v52, %v68_v51  ;;  %v189_v54 = vpop.f32.mrf.mxu3 }
  0x9f   :  { %v190_v55 = vadd.f32 %v189_v54, %v68_v51  ;;  %v126_v56 = vpop.f32.mrf.mxu0 }
  0xa0   :  { %147 = vst [vmem:[#allocation2 + $0x30] sm:$0xff] %v136_v53  ;;  %v127_v57 = vadd.f32 %v126_v56, %v53_v50  ;;  %v180_v58 = vpop.f32.mrf.mxu1 }
  0xa1   :  { %202 = vst [vmem:[#allocation2 + $0x70] sm:$0xff] %v190_v55  ;;  %v181_v59 = vadd.f32 %v180_v58, %v53_v50 }
  0xa2   :  { %144 = vst [vmem:[#allocation2 + $0x18] sm:$0xff] %v127_v57 }
  0xa3   :  { %199 = vst [vmem:[#allocation2 + $0x58] sm:$0xff] %v181_v59 }
  0xa5   :  { %v138_v61 = vpop.f32.mrf.mxu2 }
  0xa6   :  { %v139_v62 = vadd.f32 %v138_v61, %v73_v60  ;;  %v192_v63 = vpop.f32.mrf.mxu3 }
  0xa7   :  { %v193_v0 = vadd.f32 %v192_v63, %v73_v60 }
  0xa8   :  { %148 = vst [vmem:[#allocation2 + $0x38] sm:$0xff] %v139_v62 }
  0xa9   :  { %203 = vst [vmem:[#allocation2 + $0x78] sm:$0xff] %v193_v0 }
  0xaa   :  { %216 = dma.vmem_to_hbm [thread:$0]  %s209_s2, 2048, %s211_s6, [#allocation3], %s285_s7, %s285_s7, %s286_s8  }
  0xab   :  { %281 = dma.done.wait [#allocation3], 2048  }
  0xac   :  { %282 = vsyncadd [#allocation3], 4294965248 }
  0xad   :  { %221 = vsyncpa [#allocation3], 1 }

</bundles_post_ra>
